<compile_context>
chip_gen: v7x
topology: tpu7x:2x2x1
jax: 0.10.0
libtpu: 0.0.40
codegen_flags: <defaults>
</compile_context>

<pallas_src>
import functools

import jax
import jax.numpy as jnp
from jax.experimental import pallas as pl
from jax.experimental.pallas import tpu as pltpu


# ----------------------------- VMEM / tiling ---------------------------------


def _vmem_cap_bytes():
    """~75% of this generation's physical VMEM (48 MiB v7x, 96 MiB v5e/v6e)."""
    cap = None
    try:
        cap = getattr(pltpu.get_tpu_info(), "vmem_capacity_bytes", None)
    except Exception:
        cap = None
    if not cap or cap <= 0:
        cap = 64 * 1024 * 1024          # conservative fallback: assume v7x
    return int(0.75 * cap)


def _tile_bytes(tm, f, d, x_bytes):
    """Worst-case VMEM for one grid step of the heaviest (pass-1) kernel."""
    return (2 * tm * f * x_bytes        # double-buffered x tiles
            + tm * f * 2                # in-kernel bf16 copy of the x tile
            + tm * d * 4                # f32 MXU accumulator / pre-cast y
            + 2 * tm * d * 4            # double-buffered y/out tiles (f32 worst case)
            + 2 * f * d * 2             # resident bf16 weight (2 buffers)
            + 64 * d * 4)               # bias / gamma / beta / partial stats


def _pick_tm(n, f, d, x_bytes, cap, tile_rows=None):
    if tile_rows is not None:
        return min(tile_rows, n)        # caller's tile (multiple of 16 if < n)
    if _tile_bytes(n, f, d, x_bytes) <= cap:
        return n                        # single tile: no per-step overhead
    tm = 1024                           # ~0.35us/step overhead well amortized
    while tm > 16 and _tile_bytes(tm, f, d, x_bytes) > cap:
        tm //= 2
    return min(max(tm, 16), n)


# ----------------------------- kernel helpers --------------------------------


def _matmul_bias(x_ref, w_ref, b_ref):
    # bf16 MXU inputs (no-op cast when x is already bf16), f32 accumulation.
    xb = x_ref[...].astype(jnp.bfloat16)
    return jnp.dot(xb, w_ref[...], preferred_element_type=jnp.float32) + b_ref[...]


def _write_partial_stats(y, tm, n_rows, stats_ref):
    """Per-tile (sum, sum_sq) -> stats_ref block (1, 2, D), single fused store."""
    def write(yv):
        s = jnp.sum(yv, axis=0, keepdims=True)            # (1, D)
        sq = jnp.sum(yv * yv, axis=0, keepdims=True)       # (1, D)
        stats_ref[...] = jnp.concatenate([s, sq], axis=0)[None]

    if n_rows % tm == 0:
        # Statically no partial tile -> never pay for masking.
        write(y)
    else:
        i = pl.program_id(0)
        last = pl.num_programs(0) - 1

        @pl.when(i != last)
        def _():                                            # unmasked fast path
            write(y)

        @pl.when(i == last)
        def _():                                            # mask padded rows
            row = i * tm + jax.lax.broadcasted_iota(jnp.int32, (tm, 1), 0)
            write(jnp.where(row < n_rows, y, 0.0))


def _scale_shift(stats_ref, gamma_ref, beta_ref, n_rows, eps):
    # Fold BN into y * scale + shift (two (1, D) vectors per tile).
    inv_n = 1.0 / float(n_rows)
    mean = stats_ref[0:1, :] * inv_n
    var = jnp.maximum(stats_ref[1:2, :] * inv_n - mean * mean, 0.0)
    scale = gamma_ref[...] * jax.lax.rsqrt(var + eps)
    shift = beta_ref[...] - mean * scale
    return scale, shift


# ----------------------------- kernels ----------------------------------------


def _linear_kernel(x_ref, w_ref, b_ref, o_ref):
    # y = x @ W + b
    o_ref[...] = _matmul_bias(x_ref, w_ref, b_ref).astype(o_ref.dtype)


def _stats_only_kernel(x_ref, w_ref, b_ref, stats_ref, *, tm, n_rows):
    # BN pass 1, recompute variant (F < 2*D): partial stats only, no y store.
    y = _matmul_bias(x_ref, w_ref, b_ref)
    _write_partial_stats(y, tm, n_rows, stats_ref)


def _linear_stats_kernel(x_ref, w_ref, b_ref, y_ref, stats_ref, *, tm, n_rows):
    # BN pass 1, store variant (F >= 2*D): bf16 y + partial stats (from f32 y).
    y = _matmul_bias(x_ref, w_ref, b_ref)
    y_ref[...] = y.astype(y_ref.dtype)
    _write_partial_stats(y, tm, n_rows, stats_ref)


def _bn_apply_kernel(y_ref, stats_ref, gamma_ref, beta_ref, o_ref, *, n_rows, eps):
    # BN pass 2, store variant: normalize the (bf16) intermediate y.
    scale, shift = _scale_shift(stats_ref, gamma_ref, beta_ref, n_rows, eps)
    o_ref[...] = (y_ref[...].astype(jnp.float32) * scale + shift).astype(o_ref.dtype)


def _linear_bn_kernel(x_ref, w_ref, b_ref, stats_ref, gamma_ref, beta_ref, o_ref,
                      *, n_rows, eps):
    # BN pass 2, recompute variant: re-do x @ W + b (cheaper than y round trip).
    y = _matmul_bias(x_ref, w_ref, b_ref)
    scale, shift = _scale_shift(stats_ref, gamma_ref, beta_ref, n_rows, eps)
    o_ref[...] = (y * scale + shift).astype(o_ref.dtype)


# ----------------------------- module ------------------------------------------


class FeatBottleneck:
    """JAX/Pallas port of feat_bootleneck."""

    def __init__(self, feature_dim, bottleneck_dim=256, type="ori", key=None,
                 tile_rows=None):
        if key is None:
            key = jax.random.PRNGKey(0)
        k_w, _ = jax.random.split(key)

        # nn.Linear + init_weights: xavier_normal_(weight), zeros_(bias).
        # PyTorch weight is (D, F); stored transposed (F, D), cast once to bf16.
        std = (2.0 / (feature_dim + bottleneck_dim)) ** 0.5
        w_f32 = (std * jax.random.normal(k_w, (feature_dim, bottleneck_dim))
                 ).astype(jnp.float32)
        self.w = w_f32.astype(jnp.bfloat16)
        self.b = jnp.zeros((1, bottleneck_dim), jnp.float32)

        # nn.BatchNorm1d(affine=True) default init (init_weights only touches the
        # Linear in the reference module): weight=1, bias=0.
        self.gamma = jnp.ones((1, bottleneck_dim), jnp.float32)
        self.beta = jnp.zeros((1, bottleneck_dim), jnp.float32)
        self.eps = 1e-5
        # TODO(synk): BatchNorm1d running_mean/running_var momentum updates are
        # not reproduced; only the training-mode forward normalization is.

        self.type = type
        self.feature_dim = feature_dim
        self.bottleneck_dim = bottleneck_dim
        self.tile_rows = tile_rows

    def __call__(self, x):
        n, f = x.shape
        d = self.bottleneck_dim
        x_bytes = jnp.dtype(x.dtype).itemsize
        cap = _vmem_cap_bytes()
        tm = _pick_tm(n, f, d, x_bytes, cap, self.tile_rows)
        nt = pl.cdiv(n, tm)

        cparams = pltpu.CompilerParams(
            dimension_semantics=("parallel",),      # every pass is megacore-shardable
            vmem_limit_bytes=cap)

        # Resident (constant index_map) params; x / y tiled along the batch.
        x_spec = pl.BlockSpec((tm, f), lambda i: (i, 0))
        w_spec = pl.BlockSpec((f, d), lambda i: (0, 0))
        vec_spec = pl.BlockSpec((1, d), lambda i: (0, 0))
        out_spec = pl.BlockSpec((tm, d), lambda i: (i, 0))

        mm_flops = 2 * n * f * d
        w_bytes = f * d * 2
        x_total = n * f * x_bytes

        if self.type != "bn":
            return pl.pallas_call(
                _linear_kernel,
                out_shape=jax.ShapeDtypeStruct((n, d), jnp.float32),
                grid=(nt,),
                in_specs=[x_spec, w_spec, vec_spec],
                out_specs=out_spec,
                compiler_params=cparams,
                cost_estimate=pl.CostEstimate(
                    flops=mm_flops,
                    bytes_accessed=x_total + w_bytes + d * 4 + n * d * 4,
                    transcendentals=0),
            )(x, self.w, self.b)

        # ---- type == 'bn': two-pass Linear + training-mode BatchNorm1d ------
        part_spec = pl.BlockSpec((1, 2, d), lambda i: (i, 0, 0))
        stats_spec = pl.BlockSpec((2, d), lambda i: (0, 0))
        # y round trip costs ~8*D bytes/row vs re-reading x at x_bytes*F bytes/row.
        recompute = f < 2 * d

        if recompute:
            partial = pl.pallas_call(
                functools.partial(_stats_only_kernel, tm=tm, n_rows=n),
                out_shape=jax.ShapeDtypeStruct((nt, 2, d), jnp.float32),
                grid=(nt,),
                in_specs=[x_spec, w_spec, vec_spec],
                out_specs=part_spec,
                compiler_params=cparams,
                cost_estimate=pl.CostEstimate(
                    flops=mm_flops + 3 * n * d,
                    bytes_accessed=x_total + w_bytes + d * 4 + nt * 2 * d * 4,
                    transcendentals=0),
            )(x, self.w, self.b)
            stats = jnp.sum(partial, axis=0)            # (2, D) tiny cross-tile reduce
            return pl.pallas_call(
                functools.partial(_linear_bn_kernel, n_rows=n, eps=self.eps),
                out_shape=jax.ShapeDtypeStruct((n, d), jnp.float32),
                grid=(nt,),
                in_specs=[x_spec, w_spec, vec_spec, stats_spec, vec_spec, vec_spec],
                out_specs=out_spec,
                compiler_params=cparams,
                cost_estimate=pl.CostEstimate(
                    flops=mm_flops + 2 * n * d,
                    bytes_accessed=x_total + w_bytes + n * d * 4 + 8 * d * 4,
                    transcendentals=d),
            )(x, self.w, self.b, stats, self.gamma, self.beta)

        # F >= 2*D: store the intermediate y once, in bf16 (half the round trip).
        y_spec = pl.BlockSpec((tm, d), lambda i: (i, 0))
        y_bf16, partial = pl.pallas_call(
            functools.partial(_linear_stats_kernel, tm=tm, n_rows=n),
            out_shape=(jax.ShapeDtypeStruct((n, d), jnp.bfloat16),
                       jax.ShapeDtypeStruct((nt, 2, d), jnp.float32)),
            grid=(nt,),
            in_specs=[x_spec, w_spec, vec_spec],
            out_specs=(y_spec, part_spec),
            compiler_params=cparams,
            cost_estimate=pl.CostEstimate(
                flops=mm_flops + 3 * n * d,
                bytes_accessed=x_total + w_bytes + d * 4 + n * d * 2 + nt * 2 * d * 4,
                transcendentals=0),
        )(x, self.w, self.b)
        stats = jnp.sum(partial, axis=0)
        return pl.pallas_call(
            functools.partial(_bn_apply_kernel, n_rows=n, eps=self.eps),
            out_shape=jax.ShapeDtypeStruct((n, d), jnp.float32),
            grid=(nt,),
            in_specs=[y_spec, stats_spec, vec_spec, vec_spec],
            out_specs=out_spec,
            compiler_params=cparams,
            cost_estimate=pl.CostEstimate(
                flops=2 * n * d,
                bytes_accessed=n * d * 2 + n * d * 4 + 8 * d * 4,
                transcendentals=d),
        )(y_bf16, stats, self.gamma, self.beta)


# ----------------------------- references / main --------------------------------


def _ref_linear(model, x):
    # Mirrors the kernel's bf16 rounding of x and W; accumulation in f32.
    xb = x.astype(jnp.bfloat16).astype(jnp.float32)
    wb = model.w.astype(jnp.float32)
    return xb @ wb + model.b


def _ref_bn(model, x, store_bf16):
    z = _ref_linear(model, x)
    mu = z.mean(0, keepdims=True)
    var = ((z - mu) ** 2).mean(0, keepdims=True)           # biased (training mode)
    scale = model.gamma / jnp.sqrt(var + model.eps)
    shift = model.beta - mu * scale
    if store_bf16:
        # Mirrors the bf16 HBM round trip of the intermediate y (F >= 2*D path).
        z = z.astype(jnp.bfloat16).astype(jnp.float32)
    return z * scale + shift


if __name__ == "__main__":
    key = jax.random.PRNGKey(0)
    k_x, k_p, k_x2 = jax.random.split(key, 3)

    # --- small default config: F=32 -> D=256 (BN uses the recompute path) ----
    batch, feature_dim, bottleneck_dim = 64, 32, 256
    x = jax.random.normal(k_x, (batch, feature_dim), jnp.float32)

    model = FeatBottleneck(feature_dim, bottleneck_dim, type="ori", key=k_p)
    y = jax.block_until_ready(model(x))
    ref = _ref_linear(model, x)
    assert jnp.allclose(y, ref, atol=1e-3, rtol=1e-3), \
        float(jnp.max(jnp.abs(y - ref)))

    # bf16 activations are accepted directly (no wrapper-side cast added).
    y16 = jax.block_until_ready(model(x.astype(jnp.bfloat16)))
    assert jnp.allclose(y16, ref, atol=1e-3, rtol=1e-3), \
        float(jnp.max(jnp.abs(y16 - ref)))

    model_bn = FeatBottleneck(feature_dim, bottleneck_dim, type="bn", key=k_p)
    y_bn = jax.block_until_ready(model_bn(x))
    ref_bn = _ref_bn(model_bn, x, store_bf16=False)
    assert jnp.allclose(y_bn, ref_bn, atol=1e-3, rtol=1e-3), \
        float(jnp.max(jnp.abs(y_bn - ref_bn)))

    # --- multi-tile grid incl. partial last tile: batch=40, 16-row tiles -----
    x2 = jax.random.normal(k_x2, (40, feature_dim), jnp.float32)
    for t in ("ori", "bn"):
        m = FeatBottleneck(feature_dim, bottleneck_dim, type=t, key=k_p,
                           tile_rows=16)
        out2 = jax.block_until_ready(m(x2))
        ref2 = _ref_linear(m, x2) if t == "ori" else _ref_bn(m, x2, store_bf16=False)
        assert jnp.allclose(out2, ref2, atol=1e-3, rtol=1e-3), \
            float(jnp.max(jnp.abs(out2 - ref2)))

    # --- F >= 2*D exercises the store-and-reload path (bf16 intermediate y) --
    f_big = 512
    x3 = jax.random.normal(k_x2, (40, f_big), jnp.float32)
    m3 = FeatBottleneck(f_big, bottleneck_dim, type="bn", key=k_p, tile_rows=16)
    out3 = jax.block_until_ready(m3(x3))
    ref3 = _ref_bn(m3, x3, store_bf16=True)
    assert jnp.allclose(out3, ref3, atol=1e-3, rtol=1e-3), \
        float(jnp.max(jnp.abs(out3 - ref3)))

    print("KERNEL_OK")
</pallas_src>

<mosaic_0001>
module attributes {stable_mosaic.version = 11 : i64} {
  func.func @_linear_kernel(%arg0: i32, %arg1: memref<64x32xf32, #tpu.memory_space<vmem>>, %arg2: memref<32x256xbf16, #tpu.memory_space<vmem>>, %arg3: memref<1x256xf32, #tpu.memory_space<vmem>>, %arg4: memref<64x256xf32, #tpu.memory_space<vmem>>) attributes {dimension_semantics = [#tpu.dimension_semantics<parallel>], iteration_bounds = array<i64: 1>, scalar_prefetch = 0 : i64, scratch_operands = 0 : i64, tpu.core_type = #tpu.core_type<tc>, window_params = [{transform_indices = @transform_0, window_bounds = array<i64: 64, 32>}, {pipeline_mode = #tpu.pipeline_mode<synchronous>, transform_indices = @transform_1, window_bounds = array<i64: 32, 256>}, {pipeline_mode = #tpu.pipeline_mode<synchronous>, transform_indices = @transform_2, window_bounds = array<i64: 1, 256>}, {transform_indices = @transform_3, window_bounds = array<i64: 64, 256>}]} {
    %c0 = arith.constant 0 : index
    %c0_0 = arith.constant 0 : index
    %0 = vector.load %arg1[%c0, %c0_0] : memref<64x32xf32, #tpu.memory_space<vmem>>, vector<64x32xf32>
    %1 = arith.truncf %0 : vector<64x32xf32> to vector<64x32xbf16>
    %c0_1 = arith.constant 0 : index
    %c0_2 = arith.constant 0 : index
    %2 = vector.load %arg2[%c0_1, %c0_2] : memref<32x256xbf16, #tpu.memory_space<vmem>>, vector<32x256xbf16>
    %cst = arith.constant dense<0.000000e+00> : vector<64x256xf32>
    %3 = tpu.matmul %1, %2, %cst {dimension_numbers = #tpu.dot_dimension_numbers<[1], [0], [0], [1], [0, 0, 1, 1], [], []>} : vector<64x32xbf16>, vector<32x256xbf16>, vector<64x256xf32> -> vector<64x256xf32>
    %c0_3 = arith.constant 0 : index
    %c0_4 = arith.constant 0 : index
    %4 = vector.load %arg3[%c0_3, %c0_4] : memref<1x256xf32, #tpu.memory_space<vmem>>, vector<1x256xf32>
    %5 = vector.broadcast %4 : vector<1x256xf32> to vector<64x256xf32>
    %6 = arith.addf %3, %5 : vector<64x256xf32>
    %c0_5 = arith.constant 0 : index
    %c0_6 = arith.constant 0 : index
    %7 = vector.load %arg4[%c0_5, %c0_6] : memref<64x256xf32, #tpu.memory_space<vmem>>, vector<64x256xf32>
    tpu.vector_store %arg4[%c0_5, %c0_6], %6 {strides = array<i32>} : memref<64x256xf32, #tpu.memory_space<vmem>>, vector<64x256xf32>,
    return
  }
  func.func @transform_0(%arg0: i32) -> (i32, i32) {
    %c0_i32 = arith.constant 0 : i32
    %c0_i32_0 = arith.constant 0 : i32
    return %arg0, %c0_i32 : i32, i32
  }
  func.func @transform_1(%arg0: i32) -> (i32, i32) {
    %c0_i32 = arith.constant 0 : i32
    %c0_i32_0 = arith.constant 0 : i32
    %c0_i32_1 = arith.constant 0 : i32
    return %c0_i32, %c0_i32_0 : i32, i32
  }
  func.func @transform_2(%arg0: i32) -> (i32, i32) {
    %c0_i32 = arith.constant 0 : i32
    %c0_i32_0 = arith.constant 0 : i32
    %c0_i32_1 = arith.constant 0 : i32
    return %c0_i32, %c0_i32_0 : i32, i32
  }
  func.func @transform_3(%arg0: i32) -> (i32, i32) {
    %c0_i32 = arith.constant 0 : i32
    %c0_i32_0 = arith.constant 0 : i32
    return %arg0, %c0_i32 : i32, i32
  }
}

</mosaic_0001>

<bundles_post_ra>
// kernel: tpu_custom_call.1
= control target key start
LH: loop header
LB: loop body
LE: loop exit
PB: predicated region body
PF: predicated region fallthrough
CT: control target
= control target key end

     0   :  { %v228_v2 = vmov 0   ;;  %s303_s0 = inlined_call_operand.vmem [shape: f32[64,32], index: 0, kind: input, shape index: {}]   ;;  %s304_s1 = inlined_call_operand.vmem [shape: bf16[32,256], index: 1, kind: input, shape index: {}]   ;;  %s305_s2 = inlined_call_operand.vmem [shape: f32[1,256], index: 2, kind: input, shape index: {}]   ;;  %s306_s3 = inlined_call_operand.hbm [shape: f32[64,256], index: 3, kind: output, shape index: {}]  }
   0x1   :  { %v198_v0 = vld [vmem:[%s304_s1 + $0x4] ss:$8 sps:$4 sm:$0xff]   ;;  %v200_v1 = vld [vmem:[%s304_s1] ss:$8 sps:$4 sm:$0xff]   ;;  %109 = vmatprep.mubr.bf16.mxu0 %v228_v2  ;;  %129 = vmatprep.mubr.bf16.mxu1 %v228_v2  ;;  %v201_v3 = vld [vmem:[%s304_s1 + $0x14] ss:$8 sps:$4 sm:$0xff]  }
   0x2   :  { %77 = vmatprep.subr.bf16.mxu0 %v198_v0  ;;  %190 = vmatprep.subr.bf16.mxu1 %v198_v0  ;;  %v203_v4 = vld [vmem:[%s304_s1 + $0x10] ss:$8 sps:$4 sm:$0xff]   ;;  %v16_v5 = vld [vmem:[%s303_s0] sm:$0xff]  ;;  %v17_v6 = vld [vmem:[%s303_s0 + $0x8] sm:$0xff] }
   0x3   :  { %78 = vmatpush1.bf16.msra.mxu0 %v200_v1  ;;  %192 = vmatpush1.bf16.msra.mxu1 %v200_v1  ;;  %v20_v7 = vld [vmem:[%s303_s0 + $0x20] sm:$0xff]  ;;  %v21_v8 = vld [vmem:[%s303_s0 + $0x28] sm:$0xff] }
   0x4   :  { %79 = vmatprep.subr.bf16.mxu0 %v201_v3  ;;  %191 = vmatprep.subr.bf16.mxu1 %v201_v3 }
   0x5   :  { %8 = vsyncpa [#allocation3], 0  ;;  %v24_v9 = vpack.c.bf16 %v17_v6, %v16_v5  ;;  %v26_v10 = vpack.c.bf16 %v21_v8, %v20_v7  ;;  %vm64_vm0 = vcmask 261120   ;;  %v18_v11 = vld [vmem:[%s303_s0 + $0x10] sm:$0xff]  ;;  %v19_v12 = vld [vmem:[%s303_s0 + $0x18] sm:$0xff]  ;;  %v34_v17 = vlaneseq }
   0x6   :  { %v22_v13 = vld [vmem:[%s303_s0 + $0x30] sm:$0xff]  ;;  %v23_v14 = vld [vmem:[%s303_s0 + $0x38] sm:$0xff]  ;;  %v25_v15 = vpack.c.bf16 %v19_v12, %v18_v11  ;;  %v32_v20 = vld [vmem:[%s305_s2] sm:$0x3]  ;;  %s229_s0 = smov [#allocation2]  }
   0x7   :  { %80 = vmatpush1.bf16.msra.mxu0 %v203_v4  ;;  %193 = vmatpush1.bf16.msra.mxu1 %v203_v4  ;;  %v27_v16 = vpack.c.bf16 %v23_v14, %v22_v13  ;;  %v35_v18 = vshrl.u32 %v34_v17, 7  ;;  %s171_s2 = sshll.u32 %s229_s0, 4  ;;  %s172_s2 = int_to_ptr.vmem [resolvable:$true] %s171_s2 }
   0x8   :  { %s204_s10 = scalar_lea.vmem %s172_s2, 2048  ;;  %p209_p1 = scmp.lt.s32.totalorder %s172_s2, %s172_s2 }
   0x9   :  { %v36_v19 = vsub.s32 0, %v35_v18  ;;  %v40_v21 = vsub.s32 1, %v35_v18  ;;  %p205_p0 = scmp.ne.s32.totalorder %s172_s2, %s204_s10  ;;  %p210_p2 = scmp.lt.s32.totalorder %s204_s10, %s204_s10 }
   0xa   :  { %186 = vmatmul.mubr.msk.bf16.vlgmr.msra.gmra.mrb[0].mxu0 %vm64_vm0, %v24_v9  ;;  %188 = vmatmul.mubr.msk.bf16.vlgmr.msra.gmra.mrb[0].mxu1 %vm64_vm0, %v26_v10 }
   0xb   :  { %119 = vmatprep.mubr.bf16.mxu0 %v228_v2  ;;  %139 = vmatprep.mubr.bf16.mxu1 %v228_v2  ;;  %v37_v22 = vrot.slane %v32_v20, %v36_v19  ;;  %v41_v23 = vrot.slane %v32_v20, %v40_v21  ;;  %p211_p3 = por %p210_p2, %p209_p1 }
   0xd   :  { %p212_p4 = pnand %p211_p3, %p205_p0 }
  0x12   :  { %187 = vmatmul.mubr.msk.bf16.gmra.mrb[4].mxu0 %vm64_vm0, %v25_v15  ;;  %189 = vmatmul.mubr.msk.bf16.gmra.mrb[4].mxu1 %vm64_vm0, %v27_v16 }
  0xdd   :  { %v111_v24 = vpop.f32.mrb[0].mxu0  ;;  %v131_v25 = vpop.f32.mrb[0].mxu1 }
  0xde   :  { %v112_v26 = vadd.f32 %v111_v24, %v37_v22  ;;  %v132_v27 = vadd.f32 %v131_v25, %v37_v22  ;;  %v113_v28 = vpop.f32.mrb[1].mxu0  ;;  %v133_v29 = vpop.f32.mrb[1].mxu1 }
  0xdf   :  { %v114_v30 = vadd.f32 %v113_v28, %v41_v23  ;;  %v134_v31 = vadd.f32 %v133_v29, %v41_v23  ;;  %v115_v32 = vpop.f32.mrb[2].mxu0  ;;  %v135_v33 = vpop.f32.mrb[2].mxu1 }
  0xe0   :  { %150 = vst [vmem:[#allocation2] sm:$0xff] %v112_v26  ;;  %158 = vst [vmem:[#allocation2 + $0x40] sm:$0xff] %v132_v27  ;;  %v116_v34 = vadd.f32 %v115_v32, %v37_v22  ;;  %v136_v35 = vadd.f32 %v135_v33, %v37_v22  ;;  %v117_v36 = vpop.f32.mrb[3].mxu0  ;;  %v137_v37 = vpop.f32.mrb[3].mxu1 }
  0xe1   :  { %151 = vst [vmem:[#allocation2 + $0x8] sm:$0xff] %v114_v30  ;;  %159 = vst [vmem:[#allocation2 + $0x48] sm:$0xff] %v134_v31  ;;  %v118_v38 = vadd.f32 %v117_v36, %v41_v23  ;;  %v138_v39 = vadd.f32 %v137_v37, %v41_v23 }
  0xe2   :  { %152 = vst [vmem:[#allocation2 + $0x10] sm:$0xff] %v116_v34  ;;  %160 = vst [vmem:[#allocation2 + $0x50] sm:$0xff] %v136_v35 }
  0xe3   :  { %153 = vst [vmem:[#allocation2 + $0x18] sm:$0xff] %v118_v38  ;;  %161 = vst [vmem:[#allocation2 + $0x58] sm:$0xff] %v138_v39 }
  0xe5   :  { %v121_v40 = vpop.f32.mrb[4].mxu0  ;;  %v141_v41 = vpop.f32.mrb[4].mxu1 }
  0xe6   :  { %v122_v42 = vadd.f32 %v121_v40, %v37_v22  ;;  %v142_v43 = vadd.f32 %v141_v41, %v37_v22  ;;  %v123_v44 = vpop.f32.mrb[5].mxu0  ;;  %v143_v45 = vpop.f32.mrb[5].mxu1 }
  0xe7   :  { %v124_v46 = vadd.f32 %v123_v44, %v41_v23  ;;  %v144_v47 = vadd.f32 %v143_v45, %v41_v23  ;;  %v125_v48 = vpop.f32.mrb[6].mxu0  ;;  %v145_v49 = vpop.f32.mrb[6].mxu1 }
  0xe8   :  { %154 = vst [vmem:[#allocation2 + $0x20] sm:$0xff] %v122_v42  ;;  %162 = vst [vmem:[#allocation2 + $0x60] sm:$0xff] %v142_v43  ;;  %v126_v50 = vadd.f32 %v125_v48, %v37_v22  ;;  %v146_v51 = vadd.f32 %v145_v49, %v37_v22  ;;  %v127_v52 = vpop.f32.mrb[7].mxu0  ;;  %v147_v53 = vpop.f32.mrb[7].mxu1 }
  0xe9   :  { %155 = vst [vmem:[#allocation2 + $0x28] sm:$0xff] %v124_v46  ;;  %163 = vst [vmem:[#allocation2 + $0x68] sm:$0xff] %v144_v47  ;;  %v128_v54 = vadd.f32 %v127_v52, %v41_v23  ;;  %v148_v55 = vadd.f32 %v147_v53, %v41_v23 }
  0xea   :  { %156 = vst [vmem:[#allocation2 + $0x30] sm:$0xff] %v126_v50  ;;  %164 = vst [vmem:[#allocation2 + $0x70] sm:$0xff] %v146_v51 }
  0xeb   :  { %157 = vst [vmem:[#allocation2 + $0x38] sm:$0xff] %v128_v54  ;;  %165 = vst [vmem:[#allocation2 + $0x78] sm:$0xff] %v148_v55 }
  0xec   :  { %215 = shalt.err (!%p212_p4)
}
  0xed   :  { %s216_s13 = scalar_lea.hbm %s306_s3, 2048 }
  0xee   :  { %p217_p5 = scmp.ne.s32.totalorder %s306_s3, %s216_s13  ;;  %p220_p6 = scmp.lt.u32.totalorder %s216_s13, %s306_s3 }
  0xf0   :  { %p222_p7 = pnand %p220_p6, %p217_p5 }
  0xf2   :  { %225 = shalt.err (!%p222_p7)
}
  0xf3   :  { %s230_s18 = smov 256   ;;  %s231_s19 = smov 16  }
  0xf4   :  { %177 = dma.vmem_to_hbm [thread:$0]  %s172_s2, 2048, %s306_s3, [#allocation3], %s230_s18, %s230_s18, %s231_s19  }
  0xf5   :  { %226 = dma.done.wait [#allocation3], 2048  }
  0xf6   :  { %227 = vsyncadd [#allocation3], 4294965248 }
  0xf7   :  { %181 = vsyncpa [#allocation3], 1 }

</bundles_post_ra>
